<compile_context>
chip_gen: v5e
topology: v5e:2x2
jax: 0.10.0
libtpu: 0.0.40
codegen_flags: <defaults>
</compile_context>

<pallas_src>
import numpy as np
from functools import partial

import jax
import jax.numpy as jnp
from jax.experimental import pallas as pl
from jax.experimental.pallas import tpu as pltpu


# ---------------- small synthetic config (consistent with the module) ----------------
prior_box_param = {
    'min_sizes': [7.0, 10.0, 15.0, 25.0],
    'aspect_ratios': [0.3],
    'offset_ws': [0.5],
    'offset_hs': [0.5],
    'image_shape': [1, 3, 64, 128],
    'feature_map_shape': [1, 42, 4, 8],   # -> 4*8 cells * 4 sizes = 128 priors
    'variance': [0.1],
}
detection_output_param = {'nms_top_k': 64, 'nms_threshold': 0.35,
                          'keep_top_k': 32, 'conf_threshold': 0.01}


def _round_up(x, m):
    return ((x + m - 1) // m) * m


# ---------------- prior-box generation (glue, numpy) ----------------
def gen_prior_boxes(p):
    min_sizes = np.asarray(p['min_sizes'], dtype=np.float32)
    ars = np.asarray(p['aspect_ratios'], dtype=np.float32)
    var = np.asarray(p['variance'], dtype=np.float32)
    offset_ws = np.asarray(p['offset_ws'], dtype=np.float32)
    offset_hs = np.asarray(p['offset_hs'], dtype=np.float32)
    image_h, image_w = p['image_shape'][2], p['image_shape'][3]
    layer_h, layer_w = p['feature_map_shape'][2], p['feature_map_shape'][3]
    step_h = image_h / layer_h
    step_w = image_w / layer_w
    shift_h, shift_w = np.meshgrid(np.arange(layer_h), np.arange(layer_w), indexing='ij')
    shifts = np.stack([shift_w.reshape(-1), shift_h.reshape(-1)], axis=1).astype(np.float32)
    offset_h, offset_w = np.meshgrid(offset_hs, offset_ws, indexing='xy')
    offsets = np.stack([offset_w.reshape(-1), offset_h.reshape(-1)], axis=1).astype(np.float32)
    centers = (shifts[:, None, :] + offsets[None, :, :]).reshape(-1, 2)
    centers = centers * np.array([step_w, step_h], dtype=np.float32)
    box_widths = (min_sizes[:, None] * np.sqrt(ars)[None, :]).reshape(-1)
    box_heights = (min_sizes[:, None] / np.sqrt(ars)[None, :]).reshape(-1)
    xmins = (centers[:, 0][:, None] - box_widths[None, :]).reshape(-1, 1)
    ymins = (centers[:, 1][:, None] - box_heights[None, :]).reshape(-1, 1)
    xmaxs = (centers[:, 0][:, None] + box_widths[None, :]).reshape(-1, 1)
    ymaxs = (centers[:, 1][:, None] + box_heights[None, :]).reshape(-1, 1)
    anchors = np.hstack([xmins, ymins, xmaxs, ymaxs]).astype(np.float32)
    variance = (np.ones_like(anchors) * var).astype(np.float32)
    return anchors, variance


# ---------------- Pallas kernel: bbox decode (interleaved-lane layout) --------------
def _decode_kernel(consts_ref, loc_ref, out_ref):
    # loc_ref/out_ref: [B, T] with lanes interleaved as (prior g, coord c): lane = 4g+c
    # consts_ref:      [5, T] rows = [ac, pc, av, swh, center_mask], shared across B.
    loc = loc_ref[...]                         # [B, T]
    ac = consts_ref[0:1, :]                    # [1, T]  variance*prior_size (cx,cy,cx,cy)
    pc = consts_ref[1:2, :]                    # [1, T]  prior centers       (px,py,px,py)
    av = consts_ref[2:3, :]                    # [1, T]  size variances      (v2,v3,v2,v3)
    swh = consts_ref[3:4, :]                   # [1, T]  signed half extents (-w/2,-h/2,+w/2,+h/2)
    is_center = consts_ref[4:5, :] > 0.5       # [1, T]  lanes with c in {0,1}

    T = loc.shape[-1]
    # Lane shuffle so every lane sees its prior's center deltas (l0,l1) and size
    # deltas (l2,l3).  CORRECTNESS NOTE: this relies on lanes being grouped in
    # quads (4*g+c) with T a multiple of 4; the roll wrap-around lanes are
    # always discarded by the is_center select (wrap hits lanes {0,1} for the
    # +2 roll and lanes {T-2,T-1} for the -2 roll, which keep `loc` directly).
    loc_down = pltpu.roll(loc, shift=2, axis=1)       # lane j <- loc[j-2]
    loc_up = pltpu.roll(loc, shift=T - 2, axis=1)     # lane j <- loc[j+2]
    lc = jnp.where(is_center, loc, loc_down)          # [l0, l1, l0, l1] per prior
    ls = jnp.where(is_center, loc_up, loc)            # [l2, l3, l2, l3] per prior

    # out = [xmin, ymin, xmax, ymax] per prior (centers +/- half extents).
    out_ref[...] = ac * lc + pc + jnp.exp(av * ls) * swh


def _pack_decode_constants(prior_boxes_np, variances_np):
    """Static prior-derived terms as ONE [5, 4*P] f32 slab (no per-batch tiling)."""
    pb = np.asarray(prior_boxes_np, dtype=np.float32)
    var = np.asarray(variances_np, dtype=np.float32)
    pcx = (pb[:, 0] + pb[:, 2]) * 0.5
    pcy = (pb[:, 1] + pb[:, 3]) * 0.5
    pw = pb[:, 2] - pb[:, 0]
    ph = pb[:, 3] - pb[:, 1]
    P = pb.shape[0]
    ac = np.stack([var[:, 0] * pw, var[:, 1] * ph, var[:, 0] * pw, var[:, 1] * ph], 1).reshape(-1)
    pc = np.stack([pcx, pcy, pcx, pcy], 1).reshape(-1)
    av = np.stack([var[:, 2], var[:, 3], var[:, 2], var[:, 3]], 1).reshape(-1)
    swh = np.stack([-0.5 * pw, -0.5 * ph, 0.5 * pw, 0.5 * ph], 1).reshape(-1)
    cmask = np.tile(np.array([1.0, 1.0, 0.0, 0.0], dtype=np.float32), P)
    consts = np.stack([ac, pc, av, swh, cmask], axis=0).astype(np.float32)   # [5, 4P]
    return jnp.asarray(consts)


def _pick_lane_tile(total_lanes, max_tile=16 * 1024):
    """Largest multiple of 128 dividing total_lanes, capped for v7x VMEM (64 MiB)."""
    assert total_lanes % 128 == 0
    best = 128
    t = 128
    cap = min(total_lanes, max_tile)
    while t <= cap:
        if total_lanes % t == 0:
            best = t
        t += 128
    return best


def decode_bboxes_pallas(locs_flat, consts):
    """locs_flat: [B, 4*P] f32 (interleaved); consts: [5, 4*P]. Returns [B, 4*P]."""
    B, L = locs_flat.shape
    tile = _pick_lane_tile(L)
    grid = (L // tile,)
    return pl.pallas_call(
        _decode_kernel,
        out_shape=jax.ShapeDtypeStruct((B, L), jnp.float32),
        grid=grid,
        in_specs=[pl.BlockSpec((5, tile), lambda j: (0, j)),
                  pl.BlockSpec((B, tile), lambda j: (0, j))],
        out_specs=pl.BlockSpec((B, tile), lambda j: (0, j)),
        compiler_params=pltpu.CompilerParams(
            dimension_semantics=("parallel",),          # lane tiles split across TCs (v7x)
            vmem_limit_bytes=32 * 1024 * 1024),
    )(consts, locs_flat)


# ------------- jitted device-side preprocessing: decode + top-k candidate reduce -----
@partial(jax.jit, static_argnames=("nms_top_k", "num_priors"))
def _device_preprocess(locs, conf_scores, consts, *, nms_top_k, num_priors):
    B, P, _ = locs.shape
    P_pad = consts.shape[1] // 4
    locs = locs.astype(jnp.float32)
    if P_pad != P:
        locs = jnp.pad(locs, ((0, 0), (0, P_pad - P), (0, 0)))
    locs_flat = locs.reshape(B, P_pad * 4)                 # pure view, no transpose
    dec_flat = decode_bboxes_pallas(locs_flat, consts)     # [B, 4*P_pad]
    decoded = dec_flat.reshape(B, P_pad, 4)
    if P_pad != P:
        decoded = decoded[:, :P, :]

    # On-device candidate filtering: only nms_top_k candidates/image go to host.
    k = min(nms_top_k, num_priors)
    scores1 = conf_scores[:, :, 1].astype(jnp.float32)
    top_vals, top_idx = jax.lax.top_k(scores1, k)          # sorted descending, [B, k]
    boxes_k = jnp.take_along_axis(decoded, top_idx[:, :, None], axis=1)   # [B, k, 4]
    return decoded, top_vals, top_idx, boxes_k


# ---------------- host NMS on the pre-reduced candidates ----------------------------
# TODO(synk): the IoU suppression loop is sequential and produces dynamic-length
# results; it has no clean static-shape Pallas equivalent, so it runs on host on
# the (small) top-k candidate subset only.
def _nms_on_candidates(boxes, scores, global_indices, score_threshold, nms_threshold):
    # boxes [k,4], scores [k] already sorted descending; global_indices [k].
    sel = scores > score_threshold
    boxes = boxes[sel]
    gidx = global_indices[sel]
    if boxes.shape[0] == 0:
        return np.zeros((0,), dtype=np.int64)
    x1, y1, x2, y2 = boxes[:, 0], boxes[:, 1], boxes[:, 2], boxes[:, 3]
    areas = (x2 - x1 + 1.0) * (y2 - y1 + 1.0)
    keep = []
    idxs = np.arange(boxes.shape[0])
    while len(idxs) > 0:
        idx = idxs[0]
        keep.append(idx)
        idxs = idxs[1:]
        if len(idxs) == 0:
            break
        xx1 = np.maximum(x1[idxs], x1[idx])
        yy1 = np.maximum(y1[idxs], y1[idx])
        xx2 = np.minimum(x2[idxs], x2[idx])
        yy2 = np.minimum(y2[idxs], y2[idx])
        w = np.clip(xx2 - xx1 + 1.0, 0.0, None)
        h = np.clip(yy2 - yy1 + 1.0, 0.0, None)
        inter = w * h
        union = areas[idxs] - inter + areas[idx]
        iou = inter / union
        idxs = idxs[iou <= nms_threshold]
    keep = np.asarray(keep, dtype=np.int64)
    return gidx[keep].astype(np.int64)


# ---------------- module equivalent -------------------------------------------------
class DetectionOutput:
    def __init__(self, prior_box_param, detection_output_param):
        pb, var = gen_prior_boxes(prior_box_param)
        self.num_priors = pb.shape[0]
        self.prior_boxes = jnp.asarray(pb)        # unpadded originals (for reference)
        self.variances = jnp.asarray(var)
        # Pad prior count to a multiple of 32 so 4*P is lane-aligned (128).
        P_pad = _round_up(self.num_priors, 32)
        if P_pad != self.num_priors:
            extra = P_pad - self.num_priors
            pb = np.concatenate(
                [pb, np.tile(np.array([[0.0, 0.0, 1.0, 1.0]], np.float32), (extra, 1))], 0)
            var = np.concatenate([var, np.zeros((extra, 4), np.float32)], 0)
        self.consts = _pack_decode_constants(pb, var)      # [5, 4*P_pad], on device
        self.nms_top_k = detection_output_param['nms_top_k']
        self.nms_threshold = detection_output_param['nms_threshold']
        self.keep_top_k = detection_output_param['keep_top_k']
        self.conf_threshold = detection_output_param['conf_threshold']

    def __call__(self, locs, conf_scores, state_scores):
        B = locs.shape[0]
        conf_dev = jnp.asarray(conf_scores)
        state_dev = jnp.asarray(state_scores)

        decoded, top_vals, top_idx, boxes_k = _device_preprocess(
            jnp.asarray(locs), conf_dev, self.consts,
            nms_top_k=self.nms_top_k, num_priors=self.num_priors)

        # ONE coalesced, small D2H pull: [B,k,4] + [B,k] + [B,k].
        boxes_k_np, vals_np, idx_np = jax.device_get((boxes_k, top_vals, top_idx))

        detections = []
        for i in range(B):
            keep_global = _nms_on_candidates(
                boxes_k_np[i], vals_np[i], idx_np[i].astype(np.int64),
                self.conf_threshold, self.nms_threshold)
            # NOTE: mirrors the torch reference quirk exactly - this only truncates
            # when the list is ALREADY shorter than keep_top_k, i.e. it is a no-op.
            if len(keep_global) < self.keep_top_k:
                keep_global = keep_global[:self.keep_top_k]
            idx_dev = jnp.asarray(keep_global.astype(np.int32))
            # Full-batch gathers stay on device (only the tiny index vector moves H2D).
            detections.append((jnp.take(decoded, idx_dev, axis=1),
                               jnp.take(conf_dev, idx_dev, axis=1),
                               jnp.take(state_dev, idx_dev, axis=1)))
        return detections, decoded


# ---------------- pure-JAX reference of the decode hot path -------------------------
def decode_reference(locs, prior_boxes, variances):
    pcx = (prior_boxes[:, 0] + prior_boxes[:, 2]) / 2
    pcy = (prior_boxes[:, 1] + prior_boxes[:, 3]) / 2
    pw = prior_boxes[:, 2] - prior_boxes[:, 0]
    ph = prior_boxes[:, 3] - prior_boxes[:, 1]
    cx = variances[:, 0] * locs[:, :, 0] * pw + pcx
    cy = variances[:, 1] * locs[:, :, 1] * ph + pcy
    w = jnp.exp(variances[:, 2] * locs[:, :, 2]) * pw
    h = jnp.exp(variances[:, 3] * locs[:, :, 3]) * ph
    return jnp.stack([cx - w / 2, cy - h / 2, cx + w / 2, cy + h / 2], axis=2)


if __name__ == "__main__":
    key = jax.random.PRNGKey(0)
    k1, k2, k3 = jax.random.split(key, 3)

    B = 2
    P = (prior_box_param['feature_map_shape'][2]
         * prior_box_param['feature_map_shape'][3]
         * len(prior_box_param['min_sizes'])
         * len(prior_box_param['aspect_ratios']))  # 128

    locs = (jax.random.normal(k1, (B, P, 4), dtype=jnp.float32) * 0.1)
    conf_scores = jax.random.uniform(k2, (B, P, 2), dtype=jnp.float32)
    state_scores = jax.random.uniform(k3, (B, P, 2), dtype=jnp.float32)

    module = DetectionOutput(prior_box_param, detection_output_param)
    detections, decoded = module(locs, conf_scores, state_scores)
    jax.block_until_ready(decoded)
    for det in detections:
        jax.block_until_ready(det)

    # sanity check the Pallas decode against the pure-JAX reference
    ref = decode_reference(locs, module.prior_boxes, module.variances)
    np.testing.assert_allclose(np.asarray(decoded), np.asarray(ref),
                               rtol=1e-5, atol=1e-5)

    # basic shape sanity on detections
    for (b, c, s) in detections:
        assert b.shape[0] == B and b.shape[2] == 4
        assert c.shape[0] == B and c.shape[2] == 2
        assert s.shape[0] == B and s.shape[2] == 2

    print("KERNEL_OK")
</pallas_src>

<mosaic_0001>
module attributes {stable_mosaic.version = 11 : i64} {
  func.func @_decode_kernel(%arg0: i32, %arg1: memref<5x512xf32, #tpu.memory_space<vmem>>, %arg2: memref<2x512xf32, #tpu.memory_space<vmem>>, %arg3: memref<2x512xf32, #tpu.memory_space<vmem>>) attributes {dimension_semantics = [#tpu.dimension_semantics<parallel>], iteration_bounds = array<i64: 1>, scalar_prefetch = 0 : i64, scratch_operands = 0 : i64, tpu.core_type = #tpu.core_type<tc>, window_params = [{transform_indices = @transform_0, window_bounds = array<i64: 5, 512>}, {transform_indices = @transform_1, window_bounds = array<i64: 2, 512>}, {transform_indices = @transform_2, window_bounds = array<i64: 2, 512>}]} {
    %c0 = arith.constant 0 : index
    %c0_0 = arith.constant 0 : index
    %0 = vector.load %arg2[%c0, %c0_0] : memref<2x512xf32, #tpu.memory_space<vmem>>, vector<2x512xf32>
    %c0_1 = arith.constant 0 : index
    %c0_2 = arith.constant 0 : index
    %1 = vector.load %arg1[%c0_1, %c0_2] : memref<5x512xf32, #tpu.memory_space<vmem>>, vector<1x512xf32>
    %c1 = arith.constant 1 : index
    %c0_3 = arith.constant 0 : index
    %2 = vector.load %arg1[%c1, %c0_3] : memref<5x512xf32, #tpu.memory_space<vmem>>, vector<1x512xf32>
    %c2 = arith.constant 2 : index
    %c0_4 = arith.constant 0 : index
    %3 = vector.load %arg1[%c2, %c0_4] : memref<5x512xf32, #tpu.memory_space<vmem>>, vector<1x512xf32>
    %c3 = arith.constant 3 : index
    %c0_5 = arith.constant 0 : index
    %4 = vector.load %arg1[%c3, %c0_5] : memref<5x512xf32, #tpu.memory_space<vmem>>, vector<1x512xf32>
    %c4 = arith.constant 4 : index
    %c0_6 = arith.constant 0 : index
    %5 = vector.load %arg1[%c4, %c0_6] : memref<5x512xf32, #tpu.memory_space<vmem>>, vector<1x512xf32>
    %cst = arith.constant 5.000000e-01 : f32
    %6 = vector.broadcast %cst : f32 to vector<1x512xf32>
    %7 = arith.cmpf ogt, %5, %6 : vector<1x512xf32>
    %c2_i32 = arith.constant 2 : i32
    %8 = tpu.dynamic_rotate %0 by %c2_i32 dim 1 : vector<2x512xf32>, i32 -> vector<2x512xf32>
    %c510_i32 = arith.constant 510 : i32
    %9 = tpu.dynamic_rotate %0 by %c510_i32 dim 1 : vector<2x512xf32>, i32 -> vector<2x512xf32>
    %10 = vector.shape_cast %7 : vector<1x512xi1> to vector<1x512xi1>
    %11 = vector.broadcast %10 : vector<1x512xi1> to vector<2x512xi1>
    %12 = arith.select %11, %0, %8 : vector<2x512xi1>, vector<2x512xf32>
    %13 = vector.shape_cast %7 : vector<1x512xi1> to vector<1x512xi1>
    %14 = vector.broadcast %13 : vector<1x512xi1> to vector<2x512xi1>
    %15 = arith.select %14, %9, %0 : vector<2x512xi1>, vector<2x512xf32>
    %16 = vector.broadcast %1 : vector<1x512xf32> to vector<2x512xf32>
    %17 = arith.mulf %16, %12 : vector<2x512xf32>
    %18 = vector.broadcast %2 : vector<1x512xf32> to vector<2x512xf32>
    %19 = arith.addf %17, %18 : vector<2x512xf32>
    %20 = vector.broadcast %3 : vector<1x512xf32> to vector<2x512xf32>
    %21 = arith.mulf %20, %15 : vector<2x512xf32>
    %22 = math.exp %21 : vector<2x512xf32>
    %23 = vector.broadcast %4 : vector<1x512xf32> to vector<2x512xf32>
    %24 = arith.mulf %22, %23 : vector<2x512xf32>
    %25 = arith.addf %19, %24 : vector<2x512xf32>
    %c0_7 = arith.constant 0 : index
    %c0_8 = arith.constant 0 : index
    %26 = vector.load %arg3[%c0_7, %c0_8] : memref<2x512xf32, #tpu.memory_space<vmem>>, vector<2x512xf32>
    tpu.vector_store %arg3[%c0_7, %c0_8], %25 {strides = array<i32>} : memref<2x512xf32, #tpu.memory_space<vmem>>, vector<2x512xf32>,
    return
  }
  func.func @transform_0(%arg0: i32) -> (i32, i32) {
    %c0_i32 = arith.constant 0 : i32
    %c0_i32_0 = arith.constant 0 : i32
    return %c0_i32, %arg0 : i32, i32
  }
  func.func @transform_1(%arg0: i32) -> (i32, i32) {
    %c0_i32 = arith.constant 0 : i32
    %c0_i32_0 = arith.constant 0 : i32
    return %c0_i32, %arg0 : i32, i32
  }
  func.func @transform_2(%arg0: i32) -> (i32, i32) {
    %c0_i32 = arith.constant 0 : i32
    %c0_i32_0 = arith.constant 0 : i32
    return %c0_i32, %arg0 : i32, i32
  }
}

</mosaic_0001>

<bundles_post_ra>
// kernel: _device_preprocess.1
= control target key start
LH: loop header
LB: loop body
LE: loop exit
PB: predicated region body
PF: predicated region fallthrough
CT: control target
= control target key end

     0   :  { %s202_s11 = smov 2   ;;  %s203_s12 = smov 126   ;;  %v40_v15 = vlaneseq  ;;  %v204_v16 = vmov 0   ;;  %vm177_vm7 = vcmask 1045508   ;;  %vm175_vm8 = vcmask 1041408   ;;  %s297_s1 = inlined_call_operand.vmem [shape: f32[2,512], index: 1, kind: input, shape index: {}]   ;;  %s298_s0 = inlined_call_operand.vmem [shape: f32[5,512], index: 0, kind: input, shape index: {}]   ;;  %s299_s2 = inlined_call_operand.vmem [shape: f32[2,512], index: 2, kind: output, shape index: {}]  }
   0x1   :  { %v11_v0 = vld [vmem:[%s297_s1] sm:$0xff]  ;;  %vm179_vm9 = vcmask 1043456  }
   0x2   :  { %23 = vst [vmem:[#allocation1] ss:$4 sm:$0xff] %v11_v0  ;;  %v190_v13 = vld [vmem:[%s298_s0 + $0x4] ss:$8 sm:$0xf]  ;;  %v41_v20 = vand.u32 127, %v40_v15 }
   0x3   :  { %vm21_vm0 = vcmp.gt.f32.partialorder %v190_v13, 0.5  ;;  %v188_v24 = vld [vmem:[%s298_s0 + $0x2] ss:$8 sm:$0xf] }
   0x4   :  { %v69_v17 = vsel %vm21_vm0, 1, %v204_v16  ;;  %vm64_vm1 = vcmp.lt.s32.totalorder %v41_v20, 126  ;;  %vm42_vm4 = vcmp.lt.s32.totalorder %v41_v20, 2  ;;  %v133_v31 = vperm.slane %v188_v24, 2 }
   0x5   :  { %v72_v21 = vperm.slane %v69_v17, 2  ;;  %v73_v22 = vperm.slane %v69_v17, 3  ;;  %v70_v23 = vperm.slane %v69_v17, 0  ;;  %v71_v25 = vperm.slane %v69_v17, 1 }
   0x6   :  { %v134_v32 = vperm.slane %v188_v24, 3  ;;  %v131_v37 = vperm.slane %v188_v24, 0  ;;  %v132_v38 = vperm.slane %v188_v24, 1  ;;  %v12_v54 = vld [vmem:[%s298_s0] ss:$8 sm:$0xf] }
   0x7   :  { %vm239_vm2 = vcmp.eq.s32.totalorder %v72_v21, 1  ;;  %vm243_vm3 = vcmp.eq.s32.totalorder %v73_v22, 1  ;;  %vm247_vm5 = vcmp.eq.s32.totalorder %v70_v23, 1  ;;  %vm251_vm6 = vcmp.eq.s32.totalorder %v71_v25, 1 }
   0x8   :  { %v189_v55 = vld [vmem:[%s298_s0 + $0x3] ss:$8 sm:$0xf]  ;;  %v106_v61 = vperm.slane %v12_v54, 1  ;;  %v105_v63 = vperm.slane %v12_v54, 0 }
   0x9   :  { %v24_v1 = vld.sshfl [vmem:[#allocation1] sm:$0xff pattern:$0x73625140]  ;;  %v25_v2 = vld.sshfl [vmem:[#allocation1 + $0x8] sm:$0xff pattern:$0x73625140] }
   0xa   :  { %v26_v3 = vld.sshfl [vmem:[#allocation1 + $0x10] sm:$0xff pattern:$0x73625140]  ;;  %v27_v4 = vld.sshfl [vmem:[#allocation1 + $0x18] sm:$0xff pattern:$0x73625140]  ;;  %32 = vrot.lane.b32.xlu2 %v24_v1, %s202_s11 }
   0xb   :  { %47 = vst [vmem:[#allocation1] ss:$4 sm:$0xff] %v11_v0  ;;  %v187_v62 = vld [vmem:[%s298_s0 + $0x1] ss:$8 sm:$0xf]  ;;  %v108_v1 = vperm.slane %v12_v54, 3 }
   0xc   :  { %v119_v21 = vperm.slane %v187_v62, 1  ;;  %v153_v20 = vperm.slane %v189_v55, 1  ;;  %v118_v22 = vperm.slane %v187_v62, 0  ;;  %v152_v25 = vperm.slane %v189_v55, 0 }
  0x12   :  { %v50_v5 = vld.sshfl [vmem:[#allocation1 + $0x10] sm:$0xff pattern:$0x73625140]  ;;  %v48_v6 = vld.sshfl [vmem:[#allocation1] sm:$0xff pattern:$0x73625140]  ;;  %34 = vrot.lane.b32.xlu2 %v25_v2, %s202_s11 }
  0x13   :  { %60 = vrot.lane.b32.xlu1 %v50_v5, %s203_s12  ;;  %56 = vrot.lane.b32.xlu0 %v48_v6, %s203_s12  ;;  %v51_v7 = vld.sshfl [vmem:[#allocation1 + $0x18] sm:$0xff pattern:$0x73625140]  ;;  %v49_v8 = vld.sshfl [vmem:[#allocation1 + $0x8] sm:$0xff pattern:$0x73625140] }
  0x14   :  { %78 = vst [vmem:[#allocation1] ss:$4 sm:$0xff] %v11_v0  ;;  %v121_v5 = vperm.slane %v187_v62, 3  ;;  %v154_v6 = vperm.slane %v189_v55, 2 }
  0x1b   :  { %62 = vrot.lane.b32.xlu1 %v51_v7, %s203_s12  ;;  %58 = vrot.lane.b32.xlu0 %v49_v8, %s203_s12  ;;  %v223_v9 = vld.sshfl [vmem:[#allocation1] sm:$0xff pattern:$0x73625140]  ;;  %v225_v10 = vld.sshfl [vmem:[#allocation1 + $0x8] sm:$0xff pattern:$0x73625140] }
  0x1c   :  { %v227_v11 = vld.sshfl [vmem:[#allocation1 + $0x10] sm:$0xff pattern:$0x73625140]  ;;  %v229_v12 = vld.sshfl [vmem:[#allocation1 + $0x18] sm:$0xff pattern:$0x73625140] }
  0x1d   :  { %91 = vst [vmem:[#allocation1] ss:$4 sm:$0xff] %v11_v0  ;;  %v107_v0 = vperm.slane %v12_v54, 2 }
  0x23   :  { %38 = vrot.lane.b32.xlu1 %v27_v4, %s202_s11  ;;  %36 = vrot.lane.b32.xlu0 %v26_v3, %s202_s11  ;;  %v120_v4 = vperm.slane %v187_v62, 2 }
  0x24   :  { %v94_v28 = vld.sshfl [vmem:[#allocation1 + $0x10] sm:$0xff pattern:$0x73625140]  ;;  %v95_v29 = vld.sshfl [vmem:[#allocation1 + $0x18] sm:$0xff pattern:$0x73625140] }
  0x25   :  { %v92_v34 = vld.sshfl [vmem:[#allocation1] sm:$0xff pattern:$0x73625140]  ;;  %v93_v36 = vld.sshfl [vmem:[#allocation1 + $0x8] sm:$0xff pattern:$0x73625140] }
  0x64   :  { %v234_v14 = vpop.permute.xlu2 %32 }
  0x6c   :  { %v35_v30 = vpop.permute.xlu2 %34 }
  0x6d   :  { %v45_v41 = vsel %vm42_vm4, %v234_v14, %v35_v30 }
  0x6e   :  { %v88_v60 = vsel %vm251_vm6, %v225_v10, %v45_v41 }
  0x85   :  { %v61_v18 = vpop.permute.xlu1 %60  ;;  %v57_v19 = vpop.permute.xlu0 %56 }
  0x8d   :  { %v63_v39 = vpop.permute.xlu1 %62  ;;  %v59_v40 = vpop.permute.xlu0 %58 }
  0x8e   :  { %v65_v42 = vsel %vm64_vm1, %v61_v18, %v63_v39  ;;  %v68_v43 = vsel %vm64_vm1, %v63_v39, %v57_v19  ;;  %v66_v44 = vsel %vm64_vm1, %v59_v40, %v61_v18  ;;  %v67_v45 = vsel %vm64_vm1, %v57_v19, %v59_v40 }
  0x8f   :  { %v102_v46 = vsel %vm239_vm2, %v65_v42, %v94_v28  ;;  %v103_v47 = vsel %vm243_vm3, %v68_v43, %v95_v29  ;;  %v100_v48 = vsel %vm247_vm5, %v67_v45, %v92_v34  ;;  %v101_v49 = vsel %vm251_vm6, %v66_v44, %v93_v36 }
  0x90   :  { %v141_v50 = vmul.f32 %v133_v31, %v102_v46  ;;  %v142_v51 = vmul.f32 %v134_v32, %v103_v47  ;;  %v139_v52 = vmul.f32 %v131_v37, %v100_v48  ;;  %v140_v53 = vmul.f32 %v132_v38, %v101_v49 }
  0x91   :  { %v114_v19 = vmul.f32 %v106_v61, %v88_v60 }
  0x92   :  { %v147_v56 = vmul.f32 1.442695, %v141_v50  ;;  %v149_v57 = vmul.f32 1.442695, %v142_v51  ;;  %v143_v58 = vmul.f32 1.442695, %v139_v52 }
  0x93   :  { %v145_v59 = vmul.f32 1.442695, %v140_v53  ;;  %v127_v32 = vadd.f32 %v119_v21, %v114_v19 }
  0x94   :  { %194 = vpow2.f32 %v147_v56 }
  0x95   :  { %196 = vpow2.f32 %v149_v57  ;;  %v39_v2 = vpop.permute.xlu1 %38  ;;  %v37_v3 = vpop.permute.xlu0 %36 }
  0x96   :  { %198 = vpow2.f32 %v143_v58  ;;  %v46_v7 = vsel %vm42_vm4, %v39_v2, %v234_v14  ;;  %v43_v8 = vsel %vm42_vm4, %v37_v3, %v39_v2  ;;  %v44_v10 = vsel %vm42_vm4, %v35_v30, %v37_v3 }
  0x97   :  { %200 = vpow2.f32 %v145_v59  ;;  %v87_v13 = vsel %vm247_vm5, %v223_v9, %v46_v7  ;;  %v89_v15 = vsel %vm239_vm2, %v227_v11, %v44_v10  ;;  %v90_v16 = vsel %vm243_vm3, %v229_v12, %v43_v8 }
  0x98   :  { %v115_v17 = vmul.f32 %v107_v0, %v89_v15  ;;  %v116_v18 = vmul.f32 %v108_v1, %v90_v16  ;;  %v155_v14 = vperm.slane %v189_v55, 3  ;;  %v113_v24 = vmul.f32 %v105_v63, %v87_v13 }
  0x9a   :  { %v195_v23 = vpop.eup %194  ;;  %v128_v28 = vadd.f32 %v120_v4, %v115_v17  ;;  %v129_v9 = vadd.f32 %v121_v5, %v116_v18  ;;  %v126_v33 = vadd.f32 %v118_v22, %v113_v24 }
  0x9b   :  { %v197_v29 = vpop.eup %196  ;;  %v162_v30 = vmul.f32 %v195_v23, %v154_v6 }
  0x9c   :  { %v199_v26 = vpop.eup %198  ;;  %v163_v11 = vmul.f32 %v197_v29, %v155_v14 }
  0x9d   :  { %v201_v31 = vpop.eup %200  ;;  %v166_v27 = vadd.f32 %v162_v30, %v128_v28  ;;  %v160_v34 = vmul.f32 %v199_v26, %v152_v25 }
  0x9e   :  { %v161_v12 = vmul.f32 %v201_v31, %v153_v20  ;;  %v167_v35 = vadd.f32 %v163_v11, %v129_v9 }
  0x9f   :  { %v173_v36 = vrot.slane %v166_v27, 4  ;;  %v164_v40 = vadd.f32 %v160_v34, %v126_v33 }
  0xa0   :  { %v165_v37 = vadd.f32 %v161_v12, %v127_v32  ;;  %v174_v38 = vrot.slane %v167_v35, 2 }
  0xa2   :  { %v172_v39 = vrot.slane %v165_v37, 6  ;;  %v178_v41 = vsel %vm177_vm7, %v173_v36, %v174_v38 }
  0xa4   :  { %v176_v42 = vsel %vm175_vm8, %v164_v40, %v172_v39 }
  0xa5   :  { %v180_v43 = vsel %vm179_vm9, %v176_v42, %v178_v41 }
  0xa6   :  { %182 = vst [vmem:[%s299_s2] sm:$0xff] %v180_v43 }

</bundles_post_ra>
